<compile_context>
chip_gen: v7x
topology: tpu7x:2x2x1
jax: 0.10.0
libtpu: 0.0.40
codegen_flags: <defaults>
</compile_context>

<pallas_src>
import functools

import jax
import jax.numpy as jnp
from jax import lax
from jax.experimental import pallas as pl
from jax.experimental.pallas import tpu as pltpu


def lstm_encoder_kernel(x_ref, wx_ref, bx_ref, whh_ref, out_ref, xproj_ref, *, seq_len):
    """Single-invocation LSTM trajectory encoder.

    x_ref    : (T*B, V)   flattened obs_traj (time-major, batch second), f32
    wx_ref   : (V, 4H)    fused input weight  W_emb @ W_ih   (sigmoid cols pre-scaled 0.5), f32
    bx_ref   : (1, 4H)    fused input bias    b_emb @ W_ih + b_ih + b_hh (pre-scaled),      f32
    whh_ref  : (H, 4H)    recurrent weight W_hh^T, bf16 MXU operand (pre-scaled)
    out_ref  : (B, H)     final hidden state h_T, f32
    xproj_ref: (T*B, 4H)  VMEM scratch holding the per-timestep input projection
    """
    B, H = out_ref.shape
    V = x_ref.shape[1]

    # --- Prologue: input projection for ALL timesteps on the VPU (K = V = 2). ---
    # Exact fusion of the spatial-embedding Linear into the LSTM input projection.
    x = x_ref[...]                                    # (T*B, V)
    wx = wx_ref[...]                                  # (V, 4H)
    xp = bx_ref[...] + x[:, 0:1] * wx[0:1, :]         # broadcasted FMA, (T*B, 4H)
    for v in range(1, V):
        xp = xp + x[:, v:v + 1] * wx[v:v + 1, :]
    xproj_ref[...] = xp                               # park in VMEM; reload per step

    w_hh = whh_ref[...]                               # (H, 4H) bf16, resident

    # Hoisted lane mask for PyTorch gate order (i, f, g, o):
    # sigmoid lanes [0, 2H) U [3H, 4H); tanh lanes [2H, 3H).
    lane = lax.broadcasted_iota(jnp.int32, (B, 4 * H), 1)
    sig_mask = (lane < 2 * H) | (lane >= 3 * H)

    def activate(gates):
        # Sigmoid-lane columns were pre-scaled by 0.5 wrapper-side, so on those
        # lanes sigmoid(orig) = 0.5*tanh(orig/2) + 0.5 = 0.5*tanh(gates) + 0.5.
        # One full-width EUP tanh + one VPU fma + one select per step.
        t = jnp.tanh(gates)
        return jnp.where(sig_mask, 0.5 * t + 0.5, t)

    # --- t = 0: h0 == 0 -> recurrent matmul is exactly zero; c0 == 0 -> drop f*c. ---
    acts = activate(xproj_ref[0:B, :])
    i_g = acts[:, 0 * H:1 * H]
    g_g = acts[:, 2 * H:3 * H]
    o_g = acts[:, 3 * H:4 * H]
    c = i_g * g_g
    h = o_g * jnp.tanh(c)

    # --- t = 1 .. T-1: fully unrolled; only `h @ W_hh` remains on the serial path. ---
    # bf16 operands, f32 accumulation on the MXU.
    for t in range(1, seq_len):
        gates = xproj_ref[t * B:(t + 1) * B, :] + jnp.dot(
            h.astype(jnp.bfloat16), w_hh, preferred_element_type=jnp.float32)
        acts = activate(gates)
        i_g = acts[:, 0 * H:1 * H]
        f_g = acts[:, 1 * H:2 * H]
        g_g = acts[:, 2 * H:3 * H]
        o_g = acts[:, 3 * H:4 * H]
        c = f_g * c + i_g * g_g
        h = o_g * jnp.tanh(c)

    out_ref[...] = h


def prepare_params(w_emb, b_emb, w_ih, w_hh, b_gates):
    """One-time parameter fusion, hoisted off the per-call path.

    Inputs (pre-transposed for x @ W):
      w_emb (V, E), b_emb (1, E), w_ih (E, 4H), w_hh (H, 4H), b_gates (1, 4H) = b_ih + b_hh.
    Returns fused (w_x, b_x, w_hh_bf16) with sigmoid-lane columns (i, f, o) pre-scaled
    by 0.5 so the kernel only needs a single tanh pass (sigmoid(x) = 0.5*tanh(x/2)+0.5).
    """
    H = w_hh.shape[0]
    w_x = (w_emb @ w_ih).astype(jnp.float32)             # (V, 4H)
    b_x = (b_emb @ w_ih + b_gates).astype(jnp.float32)   # (1, 4H)

    col = jnp.arange(4 * H)
    scale = jnp.where((col < 2 * H) | (col >= 3 * H), 0.5, 1.0).astype(jnp.float32)
    w_x = w_x * scale[None, :]
    b_x = b_x * scale[None, :]
    w_hh_bf16 = (w_hh * scale[None, :]).astype(jnp.bfloat16)  # 0.5 scale exact in bf16
    return w_x, b_x, w_hh_bf16


@jax.jit
def trajectory_encoder(obs_traj, w_x, b_x, w_hh_bf16):
    """obs_traj: (T, B, V) float32. Returns final hidden state (1, B, H) float32."""
    T, B, V = obs_traj.shape
    H = w_hh_bf16.shape[0]
    assert w_x.shape == (V, 4 * H) and w_hh_bf16.shape == (H, 4 * H)

    x2d = obs_traj.reshape(T * B, V).astype(jnp.float32)
    kernel = functools.partial(lstm_encoder_kernel, seq_len=T)

    vmem = pltpu.MemorySpace.VMEM
    final_h = pl.pallas_call(
        kernel,
        out_shape=jax.ShapeDtypeStruct((B, H), jnp.float32),
        in_specs=[
            pl.BlockSpec(memory_space=vmem),  # x2d        (T*B, V)
            pl.BlockSpec(memory_space=vmem),  # fused W_x  (V, 4H)
            pl.BlockSpec(memory_space=vmem),  # fused b_x  (1, 4H)
            pl.BlockSpec(memory_space=vmem),  # W_hh bf16  (H, 4H)
        ],
        out_specs=pl.BlockSpec(memory_space=vmem),
        scratch_shapes=[pltpu.VMEM((T * B, 4 * H), jnp.float32)],  # x_proj parking
    )(x2d, w_x, b_x, w_hh_bf16)

    return final_h[None]  # (1, B, H), matching `state[0]` of nn.LSTM


def reference_encoder(obs_traj, w_emb, b_emb, w_ih, w_hh, b_gates):
    """Pure-JAX f32 reference of the PyTorch forward (PyTorch gate order i, f, g, o)."""
    T, B, V = obs_traj.shape
    H = w_hh.shape[0]
    emb = obs_traj.reshape(-1, V) @ w_emb + b_emb
    emb = emb.reshape(T, B, -1)

    def step(carry, x_t):
        h, c = carry
        gates = x_t @ w_ih + h @ w_hh + b_gates[0]
        i_g = jax.nn.sigmoid(gates[:, 0 * H:1 * H])
        f_g = jax.nn.sigmoid(gates[:, 1 * H:2 * H])
        g_g = jnp.tanh(gates[:, 2 * H:3 * H])
        o_g = jax.nn.sigmoid(gates[:, 3 * H:4 * H])
        c = f_g * c + i_g * g_g
        h = o_g * jnp.tanh(c)
        return (h, c), None

    h0 = jnp.zeros((B, H), jnp.float32)
    c0 = jnp.zeros((B, H), jnp.float32)
    (h_final, _), _ = lax.scan(step, (h0, c0), emb)
    return h_final[None]  # (1, B, H)


if __name__ == "__main__":
    # Small shapes consistent with the module: obs_traj (seq_len, batch, v_dim),
    # v_dim=2, embedding_dim=64, h_dim=64, num_layers=1, dropout=0.0 (no-op).
    T, B, V = 8, 8, 2
    E, H = 64, 64

    key = jax.random.PRNGKey(0)
    k = jax.random.split(key, 7)

    obs_traj = jax.random.normal(k[0], (T, B, V), dtype=jnp.float32)

    # Deterministic synthetic parameters (nn.Linear / nn.LSTM layouts, pre-transposed).
    w_emb = 0.3 * jax.random.normal(k[1], (V, E), dtype=jnp.float32)      # Linear weight^T
    b_emb = 0.1 * jax.random.normal(k[2], (1, E), dtype=jnp.float32)      # Linear bias
    w_ih = 0.2 * jax.random.normal(k[3], (E, 4 * H), dtype=jnp.float32)   # W_ih^T
    w_hh = 0.2 * jax.random.normal(k[4], (H, 4 * H), dtype=jnp.float32)   # W_hh^T
    b_ih = 0.1 * jax.random.normal(k[5], (4 * H,), dtype=jnp.float32)
    b_hh = 0.1 * jax.random.normal(k[6], (4 * H,), dtype=jnp.float32)
    b_gates = (b_ih + b_hh)[None, :]                                       # (1, 4H)

    # One-time fusion at parameter load (off the per-call path).
    w_x, b_x, w_hh_bf16 = prepare_params(w_emb, b_emb, w_ih, w_hh, b_gates)

    final_h = trajectory_encoder(obs_traj, w_x, b_x, w_hh_bf16)
    final_h = jax.block_until_ready(final_h)

    ref = reference_encoder(obs_traj, w_emb, b_emb, w_ih, w_hh, b_gates)
    assert final_h.shape == (1, B, H)
    err = float(jnp.max(jnp.abs(final_h - ref)))
    # Slightly loose tolerance: recurrent matmul uses bf16 operands (f32 accumulate);
    # drift vs the f32 reference grows with seq_len — keep f32 operands for long sequences.
    assert jnp.allclose(final_h, ref, atol=2e-2, rtol=2e-2), \
        f"mismatch vs JAX reference (max abs err {err})"

    print("KERNEL_OK")
</pallas_src>

<mosaic_0001>
module attributes {stable_mosaic.version = 11 : i64} {
  func.func @lstm_encoder_kernel(%arg0: memref<64x2xf32, #tpu.memory_space<vmem>>, %arg1: memref<2x256xf32, #tpu.memory_space<vmem>>, %arg2: memref<1x256xf32, #tpu.memory_space<vmem>>, %arg3: memref<64x256xbf16, #tpu.memory_space<vmem>>, %arg4: memref<8x64xf32, #tpu.memory_space<vmem>>, %arg5: memref<64x256xf32, #tpu.memory_space<vmem>>) attributes {dimension_semantics = [], scalar_prefetch = 0 : i64, scratch_operands = 1 : i64, tpu.core_type = #tpu.core_type<tc>} {
    %c0 = arith.constant 0 : index
    %c0_0 = arith.constant 0 : index
    %0 = vector.load %arg0[%c0, %c0_0] : memref<64x2xf32, #tpu.memory_space<vmem>>, vector<64x2xf32>
    %c0_1 = arith.constant 0 : index
    %c0_2 = arith.constant 0 : index
    %1 = vector.load %arg1[%c0_1, %c0_2] : memref<2x256xf32, #tpu.memory_space<vmem>>, vector<2x256xf32>
    %c0_3 = arith.constant 0 : index
    %c0_4 = arith.constant 0 : index
    %2 = vector.load %arg2[%c0_3, %c0_4] : memref<1x256xf32, #tpu.memory_space<vmem>>, vector<1x256xf32>
    %3 = vector.extract_strided_slice %0 {offsets = [0, 0], sizes = [64, 1], strides = [1, 1]} : vector<64x2xf32> to vector<64x1xf32>
    %4 = vector.extract_strided_slice %1 {offsets = [0, 0], sizes = [1, 256], strides = [1, 1]} : vector<2x256xf32> to vector<1x256xf32>
    %5 = vector.broadcast %3 : vector<64x1xf32> to vector<64x256xf32>
    %6 = vector.broadcast %4 : vector<1x256xf32> to vector<64x256xf32>
    %7 = arith.mulf %5, %6 : vector<64x256xf32>
    %8 = vector.broadcast %2 : vector<1x256xf32> to vector<64x256xf32>
    %9 = arith.addf %8, %7 : vector<64x256xf32>
    %10 = vector.extract_strided_slice %0 {offsets = [0, 1], sizes = [64, 1], strides = [1, 1]} : vector<64x2xf32> to vector<64x1xf32>
    %11 = vector.extract_strided_slice %1 {offsets = [1, 0], sizes = [1, 256], strides = [1, 1]} : vector<2x256xf32> to vector<1x256xf32>
    %12 = vector.broadcast %10 : vector<64x1xf32> to vector<64x256xf32>
    %13 = vector.broadcast %11 : vector<1x256xf32> to vector<64x256xf32>
    %14 = arith.mulf %12, %13 : vector<64x256xf32>
    %15 = arith.addf %9, %14 : vector<64x256xf32>
    %c0_5 = arith.constant 0 : index
    %c0_6 = arith.constant 0 : index
    %16 = vector.load %arg5[%c0_5, %c0_6] : memref<64x256xf32, #tpu.memory_space<vmem>>, vector<64x256xf32>
    tpu.vector_store %arg5[%c0_5, %c0_6], %15 {strides = array<i32>} : memref<64x256xf32, #tpu.memory_space<vmem>>, vector<64x256xf32>,
    %c0_7 = arith.constant 0 : index
    %c0_8 = arith.constant 0 : index
    %17 = vector.load %arg3[%c0_7, %c0_8] : memref<64x256xbf16, #tpu.memory_space<vmem>>, vector<64x256xbf16>
    %18 = tpu.iota {dimensions = array<i32: 1>} : vector<8x256xi32>
    %c128_i32 = arith.constant 128 : i32
    %19 = vector.broadcast %c128_i32 : i32 to vector<8x256xi32>
    %20 = arith.cmpi slt, %18, %19 : vector<8x256xi32>
    %c192_i32 = arith.constant 192 : i32
    %21 = vector.broadcast %c192_i32 : i32 to vector<8x256xi32>
    %22 = arith.cmpi sge, %18, %21 : vector<8x256xi32>
    %23 = arith.ori %20, %22 : vector<8x256xi1>
    %c0_9 = arith.constant 0 : index
    %c0_10 = arith.constant 0 : index
    %24 = vector.load %arg5[%c0_9, %c0_10] : memref<64x256xf32, #tpu.memory_space<vmem>>, vector<8x256xf32>
    %25 = math.tanh %24 : vector<8x256xf32>
    %cst = arith.constant 5.000000e-01 : f32
    %26 = vector.broadcast %cst : f32 to vector<8x256xf32>
    %27 = arith.mulf %26, %25 : vector<8x256xf32>
    %cst_11 = arith.constant 5.000000e-01 : f32
    %28 = vector.broadcast %cst_11 : f32 to vector<8x256xf32>
    %29 = arith.addf %27, %28 : vector<8x256xf32>
    %30 = arith.select %23, %29, %25 : vector<8x256xi1>, vector<8x256xf32>
    %31 = vector.extract_strided_slice %30 {offsets = [0, 0], sizes = [8, 64], strides = [1, 1]} : vector<8x256xf32> to vector<8x64xf32>
    %32 = vector.extract_strided_slice %30 {offsets = [0, 128], sizes = [8, 64], strides = [1, 1]} : vector<8x256xf32> to vector<8x64xf32>
    %33 = vector.extract_strided_slice %30 {offsets = [0, 192], sizes = [8, 64], strides = [1, 1]} : vector<8x256xf32> to vector<8x64xf32>
    %34 = arith.mulf %31, %32 : vector<8x64xf32>
    %35 = math.tanh %34 : vector<8x64xf32>
    %36 = arith.mulf %33, %35 : vector<8x64xf32>
    %c8 = arith.constant 8 : index
    %c0_12 = arith.constant 0 : index
    %37 = vector.load %arg5[%c8, %c0_12] : memref<64x256xf32, #tpu.memory_space<vmem>>, vector<8x256xf32>
    %38 = arith.truncf %36 : vector<8x64xf32> to vector<8x64xbf16>
    %cst_13 = arith.constant dense<0.000000e+00> : vector<8x256xf32>
    %39 = tpu.matmul %38, %17, %cst_13 {dimension_numbers = #tpu.dot_dimension_numbers<[1], [0], [0], [1], [0, 0, 1, 1], [], []>} : vector<8x64xbf16>, vector<64x256xbf16>, vector<8x256xf32> -> vector<8x256xf32>
    %40 = arith.addf %37, %39 : vector<8x256xf32>
    %41 = math.tanh %40 : vector<8x256xf32>
    %cst_14 = arith.constant 5.000000e-01 : f32
    %42 = vector.broadcast %cst_14 : f32 to vector<8x256xf32>
    %43 = arith.mulf %42, %41 : vector<8x256xf32>
    %cst_15 = arith.constant 5.000000e-01 : f32
    %44 = vector.broadcast %cst_15 : f32 to vector<8x256xf32>
    %45 = arith.addf %43, %44 : vector<8x256xf32>
    %46 = arith.select %23, %45, %41 : vector<8x256xi1>, vector<8x256xf32>
    %47 = vector.extract_strided_slice %46 {offsets = [0, 0], sizes = [8, 64], strides = [1, 1]} : vector<8x256xf32> to vector<8x64xf32>
    %48 = vector.extract_strided_slice %46 {offsets = [0, 64], sizes = [8, 64], strides = [1, 1]} : vector<8x256xf32> to vector<8x64xf32>
    %49 = vector.extract_strided_slice %46 {offsets = [0, 128], sizes = [8, 64], strides = [1, 1]} : vector<8x256xf32> to vector<8x64xf32>
    %50 = vector.extract_strided_slice %46 {offsets = [0, 192], sizes = [8, 64], strides = [1, 1]} : vector<8x256xf32> to vector<8x64xf32>
    %51 = arith.mulf %48, %34 : vector<8x64xf32>
    %52 = arith.mulf %47, %49 : vector<8x64xf32>
    %53 = arith.addf %51, %52 : vector<8x64xf32>
    %54 = math.tanh %53 : vector<8x64xf32>
    %55 = arith.mulf %50, %54 : vector<8x64xf32>
    %c16 = arith.constant 16 : index
    %c0_16 = arith.constant 0 : index
    %56 = vector.load %arg5[%c16, %c0_16] : memref<64x256xf32, #tpu.memory_space<vmem>>, vector<8x256xf32>
    %57 = arith.truncf %55 : vector<8x64xf32> to vector<8x64xbf16>
    %cst_17 = arith.constant dense<0.000000e+00> : vector<8x256xf32>
    %58 = tpu.matmul %57, %17, %cst_17 {dimension_numbers = #tpu.dot_dimension_numbers<[1], [0], [0], [1], [0, 0, 1, 1], [], []>} : vector<8x64xbf16>, vector<64x256xbf16>, vector<8x256xf32> -> vector<8x256xf32>
    %59 = arith.addf %56, %58 : vector<8x256xf32>
    %60 = math.tanh %59 : vector<8x256xf32>
    %cst_18 = arith.constant 5.000000e-01 : f32
    %61 = vector.broadcast %cst_18 : f32 to vector<8x256xf32>
    %62 = arith.mulf %61, %60 : vector<8x256xf32>
    %cst_19 = arith.constant 5.000000e-01 : f32
    %63 = vector.broadcast %cst_19 : f32 to vector<8x256xf32>
    %64 = arith.addf %62, %63 : vector<8x256xf32>
    %65 = arith.select %23, %64, %60 : vector<8x256xi1>, vector<8x256xf32>
    %66 = vector.extract_strided_slice %65 {offsets = [0, 0], sizes = [8, 64], strides = [1, 1]} : vector<8x256xf32> to vector<8x64xf32>
    %67 = vector.extract_strided_slice %65 {offsets = [0, 64], sizes = [8, 64], strides = [1, 1]} : vector<8x256xf32> to vector<8x64xf32>
    %68 = vector.extract_strided_slice %65 {offsets = [0, 128], sizes = [8, 64], strides = [1, 1]} : vector<8x256xf32> to vector<8x64xf32>
    %69 = vector.extract_strided_slice %65 {offsets = [0, 192], sizes = [8, 64], strides = [1, 1]} : vector<8x256xf32> to vector<8x64xf32>
    %70 = arith.mulf %67, %53 : vector<8x64xf32>
    %71 = arith.mulf %66, %68 : vector<8x64xf32>
    %72 = arith.addf %70, %71 : vector<8x64xf32>
    %73 = math.tanh %72 : vector<8x64xf32>
    %74 = arith.mulf %69, %73 : vector<8x64xf32>
    %c24 = arith.constant 24 : index
    %c0_20 = arith.constant 0 : index
    %75 = vector.load %arg5[%c24, %c0_20] : memref<64x256xf32, #tpu.memory_space<vmem>>, vector<8x256xf32>
    %76 = arith.truncf %74 : vector<8x64xf32> to vector<8x64xbf16>
    %cst_21 = arith.constant dense<0.000000e+00> : vector<8x256xf32>
    %77 = tpu.matmul %76, %17, %cst_21 {dimension_numbers = #tpu.dot_dimension_numbers<[1], [0], [0], [1], [0, 0, 1, 1], [], []>} : vector<8x64xbf16>, vector<64x256xbf16>, vector<8x256xf32> -> vector<8x256xf32>
    %78 = arith.addf %75, %77 : vector<8x256xf32>
    %79 = math.tanh %78 : vector<8x256xf32>
    %cst_22 = arith.constant 5.000000e-01 : f32
    %80 = vector.broadcast %cst_22 : f32 to vector<8x256xf32>
    %81 = arith.mulf %80, %79 : vector<8x256xf32>
    %cst_23 = arith.constant 5.000000e-01 : f32
    %82 = vector.broadcast %cst_23 : f32 to vector<8x256xf32>
    %83 = arith.addf %81, %82 : vector<8x256xf32>
    %84 = arith.select %23, %83, %79 : vector<8x256xi1>, vector<8x256xf32>
    %85 = vector.extract_strided_slice %84 {offsets = [0, 0], sizes = [8, 64], strides = [1, 1]} : vector<8x256xf32> to vector<8x64xf32>
    %86 = vector.extract_strided_slice %84 {offsets = [0, 64], sizes = [8, 64], strides = [1, 1]} : vector<8x256xf32> to vector<8x64xf32>
    %87 = vector.extract_strided_slice %84 {offsets = [0, 128], sizes = [8, 64], strides = [1, 1]} : vector<8x256xf32> to vector<8x64xf32>
    %88 = vector.extract_strided_slice %84 {offsets = [0, 192], sizes = [8, 64], strides = [1, 1]} : vector<8x256xf32> to vector<8x64xf32>
    %89 = arith.mulf %86, %72 : vector<8x64xf32>
    %90 = arith.mulf %85, %87 : vector<8x64xf32>
    %91 = arith.addf %89, %90 : vector<8x64xf32>
    %92 = math.tanh %91 : vector<8x64xf32>
    %93 = arith.mulf %88, %92 : vector<8x64xf32>
    %c32 = arith.constant 32 : index
    %c0_24 = arith.constant 0 : index
    %94 = vector.load %arg5[%c32, %c0_24] : memref<64x256xf32, #tpu.memory_space<vmem>>, vector<8x256xf32>
    %95 = arith.truncf %93 : vector<8x64xf32> to vector<8x64xbf16>
    %cst_25 = arith.constant dense<0.000000e+00> : vector<8x256xf32>
    %96 = tpu.matmul %95, %17, %cst_25 {dimension_numbers = #tpu.dot_dimension_numbers<[1], [0], [0], [1], [0, 0, 1, 1], [], []>} : vector<8x64xbf16>, vector<64x256xbf16>, vector<8x256xf32> -> vector<8x256xf32>
    %97 = arith.addf %94, %96 : vector<8x256xf32>
    %98 = math.tanh %97 : vector<8x256xf32>
    %cst_26 = arith.constant 5.000000e-01 : f32
    %99 = vector.broadcast %cst_26 : f32 to vector<8x256xf32>
    %100 = arith.mulf %99, %98 : vector<8x256xf32>
    %cst_27 = arith.constant 5.000000e-01 : f32
    %101 = vector.broadcast %cst_27 : f32 to vector<8x256xf32>
    %102 = arith.addf %100, %101 : vector<8x256xf32>
    %103 = arith.select %23, %102, %98 : vector<8x256xi1>, vector<8x256xf32>
    %104 = vector.extract_strided_slice %103 {offsets = [0, 0], sizes = [8, 64], strides = [1, 1]} : vector<8x256xf32> to vector<8x64xf32>
    %105 = vector.extract_strided_slice %103 {offsets = [0, 64], sizes = [8, 64], strides = [1, 1]} : vector<8x256xf32> to vector<8x64xf32>
    %106 = vector.extract_strided_slice %103 {offsets = [0, 128], sizes = [8, 64], strides = [1, 1]} : vector<8x256xf32> to vector<8x64xf32>
    %107 = vector.extract_strided_slice %103 {offsets = [0, 192], sizes = [8, 64], strides = [1, 1]} : vector<8x256xf32> to vector<8x64xf32>
    %108 = arith.mulf %105, %91 : vector<8x64xf32>
    %109 = arith.mulf %104, %106 : vector<8x64xf32>
    %110 = arith.addf %108, %109 : vector<8x64xf32>
    %111 = math.tanh %110 : vector<8x64xf32>
    %112 = arith.mulf %107, %111 : vector<8x64xf32>
    %c40 = arith.constant 40 : index
    %c0_28 = arith.constant 0 : index
    %113 = vector.load %arg5[%c40, %c0_28] : memref<64x256xf32, #tpu.memory_space<vmem>>, vector<8x256xf32>
    %114 = arith.truncf %112 : vector<8x64xf32> to vector<8x64xbf16>
    %cst_29 = arith.constant dense<0.000000e+00> : vector<8x256xf32>
    %115 = tpu.matmul %114, %17, %cst_29 {dimension_numbers = #tpu.dot_dimension_numbers<[1], [0], [0], [1], [0, 0, 1, 1], [], []>} : vector<8x64xbf16>, vector<64x256xbf16>, vector<8x256xf32> -> vector<8x256xf32>
    %116 = arith.addf %113, %115 : vector<8x256xf32>
    %117 = math.tanh %116 : vector<8x256xf32>
    %cst_30 = arith.constant 5.000000e-01 : f32
    %118 = vector.broadcast %cst_30 : f32 to vector<8x256xf32>
    %119 = arith.mulf %118, %117 : vector<8x256xf32>
    %cst_31 = arith.constant 5.000000e-01 : f32
    %120 = vector.broadcast %cst_31 : f32 to vector<8x256xf32>
    %121 = arith.addf %119, %120 : vector<8x256xf32>
    %122 = arith.select %23, %121, %117 : vector<8x256xi1>, vector<8x256xf32>
    %123 = vector.extract_strided_slice %122 {offsets = [0, 0], sizes = [8, 64], strides = [1, 1]} : vector<8x256xf32> to vector<8x64xf32>
    %124 = vector.extract_strided_slice %122 {offsets = [0, 64], sizes = [8, 64], strides = [1, 1]} : vector<8x256xf32> to vector<8x64xf32>
    %125 = vector.extract_strided_slice %122 {offsets = [0, 128], sizes = [8, 64], strides = [1, 1]} : vector<8x256xf32> to vector<8x64xf32>
    %126 = vector.extract_strided_slice %122 {offsets = [0, 192], sizes = [8, 64], strides = [1, 1]} : vector<8x256xf32> to vector<8x64xf32>
    %127 = arith.mulf %124, %110 : vector<8x64xf32>
    %128 = arith.mulf %123, %125 : vector<8x64xf32>
    %129 = arith.addf %127, %128 : vector<8x64xf32>
    %130 = math.tanh %129 : vector<8x64xf32>
    %131 = arith.mulf %126, %130 : vector<8x64xf32>
    %c48 = arith.constant 48 : index
    %c0_32 = arith.constant 0 : index
    %132 = vector.load %arg5[%c48, %c0_32] : memref<64x256xf32, #tpu.memory_space<vmem>>, vector<8x256xf32>
    %133 = arith.truncf %131 : vector<8x64xf32> to vector<8x64xbf16>
    %cst_33 = arith.constant dense<0.000000e+00> : vector<8x256xf32>
    %134 = tpu.matmul %133, %17, %cst_33 {dimension_numbers = #tpu.dot_dimension_numbers<[1], [0], [0], [1], [0, 0, 1, 1], [], []>} : vector<8x64xbf16>, vector<64x256xbf16>, vector<8x256xf32> -> vector<8x256xf32>
    %135 = arith.addf %132, %134 : vector<8x256xf32>
    %136 = math.tanh %135 : vector<8x256xf32>
    %cst_34 = arith.constant 5.000000e-01 : f32
    %137 = vector.broadcast %cst_34 : f32 to vector<8x256xf32>
    %138 = arith.mulf %137, %136 : vector<8x256xf32>
    %cst_35 = arith.constant 5.000000e-01 : f32
    %139 = vector.broadcast %cst_35 : f32 to vector<8x256xf32>
    %140 = arith.addf %138, %139 : vector<8x256xf32>
    %141 = arith.select %23, %140, %136 : vector<8x256xi1>, vector<8x256xf32>
    %142 = vector.extract_strided_slice %141 {offsets = [0, 0], sizes = [8, 64], strides = [1, 1]} : vector<8x256xf32> to vector<8x64xf32>
    %143 = vector.extract_strided_slice %141 {offsets = [0, 64], sizes = [8, 64], strides = [1, 1]} : vector<8x256xf32> to vector<8x64xf32>
    %144 = vector.extract_strided_slice %141 {offsets = [0, 128], sizes = [8, 64], strides = [1, 1]} : vector<8x256xf32> to vector<8x64xf32>
    %145 = vector.extract_strided_slice %141 {offsets = [0, 192], sizes = [8, 64], strides = [1, 1]} : vector<8x256xf32> to vector<8x64xf32>
    %146 = arith.mulf %143, %129 : vector<8x64xf32>
    %147 = arith.mulf %142, %144 : vector<8x64xf32>
    %148 = arith.addf %146, %147 : vector<8x64xf32>
    %149 = math.tanh %148 : vector<8x64xf32>
    %150 = arith.mulf %145, %149 : vector<8x64xf32>
    %c56 = arith.constant 56 : index
    %c0_36 = arith.constant 0 : index
    %151 = vector.load %arg5[%c56, %c0_36] : memref<64x256xf32, #tpu.memory_space<vmem>>, vector<8x256xf32>
    %152 = arith.truncf %150 : vector<8x64xf32> to vector<8x64xbf16>
    %cst_37 = arith.constant dense<0.000000e+00> : vector<8x256xf32>
    %153 = tpu.matmul %152, %17, %cst_37 {dimension_numbers = #tpu.dot_dimension_numbers<[1], [0], [0], [1], [0, 0, 1, 1], [], []>} : vector<8x64xbf16>, vector<64x256xbf16>, vector<8x256xf32> -> vector<8x256xf32>
    %154 = arith.addf %151, %153 : vector<8x256xf32>
    %155 = math.tanh %154 : vector<8x256xf32>
    %cst_38 = arith.constant 5.000000e-01 : f32
    %156 = vector.broadcast %cst_38 : f32 to vector<8x256xf32>
    %157 = arith.mulf %156, %155 : vector<8x256xf32>
    %cst_39 = arith.constant 5.000000e-01 : f32
    %158 = vector.broadcast %cst_39 : f32 to vector<8x256xf32>
    %159 = arith.addf %157, %158 : vector<8x256xf32>
    %160 = arith.select %23, %159, %155 : vector<8x256xi1>, vector<8x256xf32>
    %161 = vector.extract_strided_slice %160 {offsets = [0, 0], sizes = [8, 64], strides = [1, 1]} : vector<8x256xf32> to vector<8x64xf32>
    %162 = vector.extract_strided_slice %160 {offsets = [0, 64], sizes = [8, 64], strides = [1, 1]} : vector<8x256xf32> to vector<8x64xf32>
    %163 = vector.extract_strided_slice %160 {offsets = [0, 128], sizes = [8, 64], strides = [1, 1]} : vector<8x256xf32> to vector<8x64xf32>
    %164 = vector.extract_strided_slice %160 {offsets = [0, 192], sizes = [8, 64], strides = [1, 1]} : vector<8x256xf32> to vector<8x64xf32>
    %165 = arith.mulf %162, %148 : vector<8x64xf32>
    %166 = arith.mulf %161, %163 : vector<8x64xf32>
    %167 = arith.addf %165, %166 : vector<8x64xf32>
    %168 = math.tanh %167 : vector<8x64xf32>
    %169 = arith.mulf %164, %168 : vector<8x64xf32>
    %c0_40 = arith.constant 0 : index
    %c0_41 = arith.constant 0 : index
    %170 = vector.load %arg4[%c0_40, %c0_41] : memref<8x64xf32, #tpu.memory_space<vmem>>, vector<8x64xf32>
    tpu.vector_store %arg4[%c0_40, %c0_41], %169 {strides = array<i32>} : memref<8x64xf32, #tpu.memory_space<vmem>>, vector<8x64xf32>,
    return
  }
}

</mosaic_0001>

<bundles_post_ra>
// kernel: trajectory_encoder.1
= control target key start
LH: loop header
LB: loop body
LE: loop exit
PB: predicated region body
PF: predicated region fallthrough
CT: control target
= control target key end

     0   :  { %v928_v1 = vmov 0   ;;  %s1225_s0 = inlined_call_operand.vmem [shape: f32[64,2], index: 0, kind: input, shape index: {}]   ;;  %s1226_s1 = inlined_call_operand.vmem [shape: f32[2,256], index: 1, kind: input, shape index: {}]   ;;  %s1227_s2 = inlined_call_operand.vmem [shape: f32[1,256], index: 2, kind: input, shape index: {}]   ;;  %s1228_s3 = inlined_call_operand.vmem [shape: bf16[64,256], index: 3, kind: input, shape index: {}]   ;;  %s1229_s4 = inlined_call_operand.hbm [shape: f32[8,64], index: 4, kind: output, shape index: {}]  }
   0x1   :  { %v19_v0 = vld [vmem:[%s1225_s0] sm:$0xff]  ;;  %829 = vset.pattern.permute.xlu0 %v928_v1  ;;  %831 = vset.pattern.permute.xlu1 %v928_v1 }
   0x2   :  { %31 = vperm.xlu0 %829, %v19_v0   ;;  %345 = vmatprep.mubr.bf16.mxu0 %v928_v1 }
   0x3   :  { %418 = vmatprep.mubr.bf16.mxu1 %v928_v1 }
   0x4   :  { %9 = vsyncpa [#allocation4], 0  ;;  %v929_v2 = vmov 1   ;;  %v968_v3 = vld [vmem:[%s1225_s0 + $0x8] sm:$0xff]  ;;  %v70_v4 = vlaneseq  ;;  %v27_v8 = vld [vmem:[%s1226_s1] sm:$0xf] }
   0x5   :  { %v28_v13 = vld [vmem:[%s1227_s2] sm:$0x3]  ;;  %v1004_v43 = vld [vmem:[%s1228_s3 + $0x4] ss:$8 sps:$4 sm:$0xff]   ;;  %v1014_v45 = vld [vmem:[%s1228_s3 + $0x14] ss:$8 sps:$4 sm:$0xff]  }
   0x6   :  { %830 = vset.pattern.permute.xlu0 %v929_v2  ;;  %v71_v5 = vshrl.u32 %v70_v4, 7  ;;  %v238_v32 = vand.u32 127, %v70_v4  ;;  %v1009_v44 = vld [vmem:[%s1228_s3] ss:$8 sps:$4 sm:$0xff]   ;;  %s930_s27 = smov 64   ;;  %313 = vmatprep.subr.bf16.mxu0 %v1004_v43  ;;  %vm309_vm1 = vcmask 523264  }
   0x7   :  { %132 = vperm.xlu0 %830, %v19_v0   ;;  %386 = vmatprep.subr.bf16.mxu1 %v1004_v43  ;;  %v1023_v46 = vld [vmem:[%s1228_s3 + $0x10] ss:$8 sps:$4 sm:$0xff]   ;;  %v1030_v47 = vld [vmem:[%s1228_s3 + $0x24] ss:$8 sps:$4 sm:$0xff]   ;;  %v1037_v48 = vld [vmem:[%s1228_s3 + $0x20] ss:$8 sps:$4 sm:$0xff]  }
   0x8   :  { %v72_v6 = vsub.s32 0, %v71_v5  ;;  %v76_v7 = vsub.s32 2, %v71_v5  ;;  %v111_v11 = vsub.s32 1, %v71_v5  ;;  %v169_v12 = vsub.s32 3, %v71_v5  ;;  %314 = vmatpush1.bf16.msra.mxu0 %v1009_v44  ;;  %387 = vmatpush1.bf16.msra.mxu1 %v1009_v44  ;;  %v1044_v49 = vld [vmem:[%s1228_s3 + $0x34] ss:$8 sps:$4 sm:$0xff]  }
   0x9   :  { %v996_v33 = vadd.s32 128, %v238_v32  ;;  %315 = vmatprep.subr.bf16.mxu0 %v1014_v45  ;;  %388 = vmatprep.subr.bf16.mxu1 %v1014_v45  ;;  %v1051_v50 = vld [vmem:[%s1228_s3 + $0x30] ss:$8 sps:$4 sm:$0xff]  }
   0xa   :  { %v73_v9 = vrot.slane %v27_v8, %v72_v6  ;;  %v77_v10 = vrot.slane %v27_v8, %v76_v7  ;;  %v166_v16 = vrot.slane %v27_v8, %v111_v11  ;;  %v170_v17 = vrot.slane %v27_v8, %v169_v12 }
   0xb   :  { %136 = vperm.xlu0 %830, %v968_v3   ;;  %v982_v19 = vrot.slane %v28_v13, %v72_v6  ;;  %v984_v20 = vrot.slane %v28_v13, %v111_v11  ;;  %vm243_vm0 = vcmp.ge.s32.totalorder %v996_v33, 192 }
   0xc   :  { %v978_v14 = vrot.slane %v73_v9, %v72_v6  ;;  %v980_v15 = vrot.slane %v77_v10, %v72_v6  ;;  %v988_v23 = vrot.slane %v166_v16, %v111_v11  ;;  %v990_v24 = vrot.slane %v170_v17, %v111_v11  ;;  %316 = vmatpush1.bf16.msra.mxu0 %v1023_v46 }
   0xd   :  { %389 = vmatpush1.bf16.msra.mxu1 %v1023_v46  ;;  %317 = vmatprep.subr.bf16.mxu0 %v1030_v47 }
   0xe   :  { %390 = vmatprep.subr.bf16.mxu1 %v1030_v47 }
   0xf   :  { %832 = vset.pattern.permute.xlu0 %v928_v1 }
  0x10   :  { %318 = vmatpush1.bf16.msra.mxu0 %v1037_v48 }
  0x11   :  { %391 = vmatpush1.bf16.msra.mxu1 %v1037_v48  ;;  %319 = vmatprep.subr.bf16.mxu0 %v1044_v49 }
  0x12   :  { %392 = vmatprep.subr.bf16.mxu1 %v1044_v49 }
  0x14   :  { %320 = vmatpush1.bf16.msra.mxu0 %v1051_v50 }
  0x15   :  { %393 = vmatpush1.bf16.msra.mxu1 %v1051_v50  ;;  %455 = vmatprep.subr.bf16.mxu0 %v1004_v43 }
  0x16   :  { %524 = vmatprep.subr.bf16.mxu1 %v1004_v43 }
  0x81   :  { %v32_v18 = vpop.permute.xlu0 %31 }
  0x82   :  { %v88_v21 = vmul.f32 %v978_v14, %v32_v18  ;;  %v89_v22 = vmul.f32 %v980_v15, %v32_v18 }
  0x84   :  { %v115_v26 = vadd.f32 %v982_v19, %v88_v21  ;;  %v116_v27 = vadd.f32 %v984_v20, %v89_v22 }
  0x86   :  { %v133_v25 = vpop.permute.xlu0 %132 }
  0x87   :  { %v181_v28 = vmul.f32 %v988_v23, %v133_v25  ;;  %v182_v29 = vmul.f32 %v990_v24, %v133_v25 }
  0x89   :  { %v197_v30 = vadd.f32 %v181_v28, %v115_v26  ;;  %v198_v31 = vadd.f32 %v182_v29, %v116_v27  ;;  %v21_v27 = vld [vmem:[%s1225_s0 + $0x10] sm:$0xff] }
  0x8a   :  { %v137_v58 = vpop.permute.xlu0 %136 }
  0x8b   :  { %856 = vtanh.f32 %v197_v30  ;;  %v183_v61 = vmul.f32 %v988_v23, %v137_v58  ;;  %v184_v62 = vmul.f32 %v990_v24, %v137_v58 }
  0x8c   :  { %858 = vtanh.f32 %v198_v31 }
  0x95   :  { %v857_v34 = vpop.eup %856 }
  0x96   :  { %v859_v35 = vpop.eup %858  ;;  %v250_v36 = vmul.f32 0.5, %v857_v34 }
  0x97   :  { %v251_v37 = vmul.f32 0.5, %v859_v35 }
  0x98   :  { %v252_v38 = vadd.f32 0.5, %v250_v36 }
  0x99   :  { %v253_v39 = vadd.f32 0.5, %v251_v37 }
  0x9b   :  { %v255_v40 = vsel %vm243_vm0, %v253_v39, %v859_v35 }
  0x9c   :  { %v256_v41 = vmul.f32 %v255_v40, %v252_v38 }
  0x9e   :  { %860 = vtanh.f32 %v256_v41 }
  0xa8   :  { %v861_v42 = vpop.eup %860 }
  0xa9   :  { %259 = vrot.lane.b32.xlu1 %v861_v42, %s930_s27 }
 0x11b   :  { %v260_v51 = vpop.permute.xlu1 %259 }
 0x11c   :  { %v262_v52 = vmul.f32 %v260_v51, %v255_v40 }
 0x11e   :  { %v265_v53 = vpack.c.bf16 %v262_v52, %v262_v52 }
 0x120   :  { %267 = vrot.lane.b32.xlu1 %v265_v53, %s930_s27 }
 0x124   :  { %36 = vperm.xlu1 %831, %v968_v3  }
 0x128   :  { %365 = vrot.lane.b32.xlu1 %v256_v41, %s930_s27 }
 0x129   :  { %833 = vset.pattern.permute.xlu1 %v929_v2 }
 0x192   :  { %v268_v54 = vpop.permute.xlu1 %267 }
 0x193   :  { %818 = vmatmul.mubr.msk.bf16.vlgmr.msra.gmra.mrb[0].mxu0 %vm309_vm1, %v268_v54 }
 0x194   :  { %456 = vmatpush1.bf16.msra.mxu0 %v1009_v44  ;;  %487 = vmatprep.mubr.bf16.mxu0 %v928_v1 }
 0x195   :  { %457 = vmatprep.subr.bf16.mxu0 %v1014_v45 }
 0x198   :  { %458 = vmatpush1.bf16.msra.mxu0 %v1023_v46 }
 0x199   :  { %459 = vmatprep.subr.bf16.mxu0 %v1030_v47 }
 0x19c   :  { %460 = vmatpush1.bf16.msra.mxu0 %v1037_v48 }
 0x19d   :  { %461 = vmatprep.subr.bf16.mxu0 %v1044_v49 }
 0x1a0   :  { %462 = vmatpush1.bf16.msra.mxu0 %v1051_v50 }
 0x1a1   :  { %593 = vmatprep.subr.bf16.mxu0 %v1004_v43 }
 0x1a3   :  { %v37_v55 = vpop.permute.xlu1 %36 }
 0x1a4   :  { %v90_v56 = vmul.f32 %v978_v14, %v37_v55  ;;  %v91_v57 = vmul.f32 %v980_v15, %v37_v55 }
 0x1a6   :  { %v117_v59 = vadd.f32 %v982_v19, %v90_v56  ;;  %v118_v60 = vadd.f32 %v984_v20, %v91_v57 }
 0x1a7   :  { %v366_v21 = vpop.permute.xlu1 %365 }
 0x1a8   :  { %v199_v63 = vadd.f32 %v183_v61, %v117_v59  ;;  %v200_v3 = vadd.f32 %v184_v62, %v118_v60 }
 0x266   :  { %v347_v0 = vpop.f32.mrb[0].mxu0 }
 0x267   :  { %v354_v4 = vadd.f32 %v347_v0, %v199_v63  ;;  %v349_v5 = vpop.f32.mrb[1].mxu0 }
 0x268   :  { %v355_v6 = vadd.f32 %v349_v5, %v200_v3  ;;  %v351_v7 = vpop.f32.mrb[2].mxu0 }
 0x269   :  { %862 = vtanh.f32 %v354_v4  ;;  %v352_v8 = vpop.f32.mrb[3].mxu0 }
 0x26a   :  { %864 = vtanh.f32 %v355_v6  ;;  %v22_v6 = vld [vmem:[%s1225_s0 + $0x18] sm:$0xff] }
 0x273   :  { %v863_v9 = vpop.eup %862 }
 0x274   :  { %v865_v10 = vpop.eup %864  ;;  %v358_v11 = vmul.f32 0.5, %v863_v9 }
 0x275   :  { %v359_v12 = vmul.f32 0.5, %v865_v10 }
 0x276   :  { %v360_v16 = vadd.f32 0.5, %v358_v11 }
 0x277   :  { %v361_v13 = vadd.f32 0.5, %v359_v12 }
 0x278   :  { %v368_v22 = vmul.f32 %v366_v21, %v360_v16 }
 0x279   :  { %v363_v17 = vsel %vm243_vm0, %v361_v13, %v865_v10 }
 0x27a   :  { %v369_v18 = vmul.f32 %v363_v17, %v360_v16 }
 0x27c   :  { %371 = vrot.lane.b32.xlu0 %v369_v18, %s930_s27 }
 0x280   :  { %41 = vperm.xlu0 %832, %v21_v27  }
 0x284   :  { %835 = vset.pattern.permute.xlu0 %v929_v2 }
 0x2ee   :  { %v372_v25 = vpop.permute.xlu0 %371 }
 0x2ef   :  { %v374_v26 = vadd.f32 %v372_v25, %v368_v22 }
 0x2f1   :  { %866 = vtanh.f32 %v374_v26 }
 0x2fb   :  { %v867_v28 = vpop.eup %866 }
 0x2fc   :  { %v376_v29 = vmul.f32 %v867_v28, %v363_v17 }
 0x2fe   :  { %v379_v30 = vpack.c.bf16 %v376_v29, %v376_v29 }
 0x2ff   :  { %v42_v32 = vpop.permute.xlu0 %41 }
 0x300   :  { %381 = vrot.lane.b32.xlu1 %v379_v30, %s930_s27  ;;  %v92_v34 = vmul.f32 %v978_v14, %v42_v32  ;;  %v93_v35 = vmul.f32 %v980_v15, %v42_v32 }
 0x302   :  { %v119_v37 = vadd.f32 %v982_v19, %v92_v34  ;;  %v120_v39 = vadd.f32 %v984_v20, %v93_v35 }
 0x304   :  { %140 = vperm.xlu1 %833, %v21_v27  }
 0x308   :  { %834 = vset.pattern.permute.xlu1 %v928_v1 }
 0x372   :  { %v382_v31 = vpop.permute.xlu1 %381 }
 0x373   :  { %819 = vmatmul.mubr.msk.bf16.vlgmr.msra.gmra.mrb[0].mxu1 %vm309_vm1, %v382_v31 }
 0x374   :  { %525 = vmatpush1.bf16.msra.mxu1 %v1009_v44  ;;  %556 = vmatprep.mubr.bf16.mxu1 %v928_v1 }
 0x375   :  { %526 = vmatprep.subr.bf16.mxu1 %v1014_v45 }
 0x378   :  { %527 = vmatpush1.bf16.msra.mxu1 %v1023_v46 }
 0x379   :  { %528 = vmatprep.subr.bf16.mxu1 %v1030_v47 }
 0x37c   :  { %529 = vmatpush1.bf16.msra.mxu1 %v1037_v48 }
 0x37d   :  { %530 = vmatprep.subr.bf16.mxu1 %v1044_v49 }
 0x380   :  { %531 = vmatpush1.bf16.msra.mxu1 %v1051_v50 }
 0x381   :  { %662 = vmatprep.subr.bf16.mxu1 %v1004_v43 }
 0x383   :  { %v141_v36 = vpop.permute.xlu1 %140 }
 0x384   :  { %v185_v38 = vmul.f32 %v988_v23, %v141_v36  ;;  %v186_v40 = vmul.f32 %v990_v24, %v141_v36 }
 0x386   :  { %v201_v41 = vadd.f32 %v185_v38, %v119_v37  ;;  %v202_v42 = vadd.f32 %v186_v40, %v120_v39 }
 0x446   :  { %v420_v51 = vpop.f32.mrb[0].mxu1 }
 0x447   :  { %v427_v52 = vadd.f32 %v420_v51, %v201_v41  ;;  %v422_v53 = vpop.f32.mrb[1].mxu1 }
 0x448   :  { %v428_v54 = vadd.f32 %v422_v53, %v202_v42  ;;  %v424_v55 = vpop.f32.mrb[2].mxu1 }
 0x449   :  { %868 = vtanh.f32 %v427_v52  ;;  %v425_v56 = vpop.f32.mrb[3].mxu1  ;;  %v23_v52 = vld [vmem:[%s1225_s0 + $0x20] sm:$0xff] }
 0x44a   :  { %870 = vtanh.f32 %v428_v54 }
 0x453   :  { %v869_v57 = vpop.eup %868 }
 0x454   :  { %v871_v58 = vpop.eup %870  ;;  %v431_v59 = vmul.f32 0.5, %v869_v57 }
 0x455   :  { %v432_v60 = vmul.f32 0.5, %v871_v58 }
 0x456   :  { %v433_v62 = vadd.f32 0.5, %v431_v59 }
 0x457   :  { %v434_v61 = vadd.f32 0.5, %v432_v60 }
 0x458   :  { %v437_v3 = vmul.f32 %v433_v62, %v374_v26 }
 0x459   :  { %v436_v63 = vsel %vm243_vm0, %v434_v61, %v871_v58 }
 0x45a   :  { %v438_v0 = vmul.f32 %v436_v63, %v433_v62 }
 0x45c   :  { %440 = vrot.lane.b32.xlu1 %v438_v0, %s930_s27 }
 0x460   :  { %46 = vperm.xlu1 %834, %v22_v6  }
 0x464   :  { %837 = vset.pattern.permute.xlu1 %v929_v2 }
 0x4ce   :  { %v441_v4 = vpop.permute.xlu1 %440 }
 0x4cf   :  { %v443_v5 = vadd.f32 %v441_v4, %v437_v3 }
 0x4d1   :  { %872 = vtanh.f32 %v443_v5 }
 0x4db   :  { %v873_v7 = vpop.eup %872 }
 0x4dc   :  { %v445_v8 = vmul.f32 %v873_v7, %v436_v63 }
 0x4de   :  { %v448_v9 = vpack.c.bf16 %v445_v8, %v445_v8 }
 0x4df   :  { %v47_v11 = vpop.permute.xlu1 %46 }
 0x4e0   :  { %450 = vrot.lane.b32.xlu0 %v448_v9, %s930_s27  ;;  %v94_v12 = vmul.f32 %v978_v14, %v47_v11  ;;  %v95_v13 = vmul.f32 %v980_v15, %v47_v11 }
 0x4e2   :  { %v121_v17 = vadd.f32 %v982_v19, %v94_v12  ;;  %v122_v21 = vadd.f32 %v984_v20, %v95_v13 }
 0x4e4   :  { %144 = vperm.xlu0 %835, %v22_v6  }
 0x4e8   :  { %836 = vset.pattern.permute.xlu0 %v928_v1 }
 0x4e9   :  { %51 = vperm.xlu0 %836, %v23_v52  }
 0x4ed   :  { %839 = vset.pattern.permute.xlu0 %v929_v2 }
 0x552   :  { %v451_v10 = vpop.permute.xlu0 %450 }
 0x553   :  { %820 = vmatmul.mubr.msk.bf16.vlgmr.msra.gmra.mrb[4].mxu0 %vm309_vm1, %v451_v10 }
 0x554   :  { %594 = vmatpush1.bf16.msra.mxu0 %v1009_v44  ;;  %625 = vmatprep.mubr.bf16.mxu0 %v928_v1 }
 0x555   :  { %595 = vmatprep.subr.bf16.mxu0 %v1014_v45 }
 0x558   :  { %596 = vmatpush1.bf16.msra.mxu0 %v1023_v46 }
 0x559   :  { %597 = vmatprep.subr.bf16.mxu0 %v1030_v47 }
 0x55c   :  { %598 = vmatpush1.bf16.msra.mxu0 %v1037_v48 }
 0x55d   :  { %599 = vmatprep.subr.bf16.mxu0 %v1044_v49 }
 0x560   :  { %600 = vmatpush1.bf16.msra.mxu0 %v1051_v50 }
 0x561   :  { %731 = vmatprep.subr.bf16.mxu0 %v1004_v43 }
 0x563   :  { %v145_v16 = vpop.permute.xlu0 %144 }
 0x564   :  { %v187_v18 = vmul.f32 %v988_v23, %v145_v16  ;;  %v188_v22 = vmul.f32 %v990_v24, %v145_v16 }
 0x566   :  { %v203_v25 = vadd.f32 %v187_v18, %v121_v17  ;;  %v204_v26 = vadd.f32 %v188_v22, %v122_v21 }
 0x568   :  { %v52_v57 = vpop.permute.xlu0 %51 }
 0x569   :  { %v96_v58 = vmul.f32 %v978_v14, %v52_v57  ;;  %v97_v59 = vmul.f32 %v980_v15, %v52_v57 }
 0x56b   :  { %v123_v61 = vadd.f32 %v982_v19, %v96_v58  ;;  %v124_v63 = vadd.f32 %v984_v20, %v97_v59 }
 0x626   :  { %v489_v27 = vpop.f32.mrb[4].mxu0 }
 0x627   :  { %v496_v28 = vadd.f32 %v489_v27, %v203_v25  ;;  %v491_v29 = vpop.f32.mrb[5].mxu0 }
 0x628   :  { %v497_v43 = vadd.f32 %v491_v29, %v204_v26  ;;  %v493_v30 = vpop.f32.mrb[6].mxu0 }
 0x629   :  { %874 = vtanh.f32 %v496_v28  ;;  %v494_v31 = vpop.f32.mrb[7].mxu0  ;;  %v24_v28 = vld [vmem:[%s1225_s0 + $0x28] sm:$0xff] }
 0x62a   :  { %876 = vtanh.f32 %v497_v43 }
 0x633   :  { %v875_v32 = vpop.eup %874 }
 0x634   :  { %v877_v34 = vpop.eup %876  ;;  %v500_v35 = vmul.f32 0.5, %v875_v32 }
 0x635   :  { %v501_v36 = vmul.f32 0.5, %v877_v34 }
 0x636   :  { %v502_v38 = vadd.f32 0.5, %v500_v35 }
 0x637   :  { %v503_v37 = vadd.f32 0.5, %v501_v36 }
 0x638   :  { %v506_v41 = vmul.f32 %v502_v38, %v443_v5 }
 0x639   :  { %v505_v39 = vsel %vm243_vm0, %v503_v37, %v877_v34 }
 0x63a   :  { %v507_v40 = vmul.f32 %v505_v39, %v502_v38 }
 0x63c   :  { %509 = vrot.lane.b32.xlu1 %v507_v40, %s930_s27 }
 0x6ae   :  { %v510_v42 = vpop.permute.xlu1 %509 }
 0x6af   :  { %v512_v51 = vadd.f32 %v510_v42, %v506_v41 }
 0x6b1   :  { %878 = vtanh.f32 %v512_v51 }
 0x6bb   :  { %v879_v53 = vpop.eup %878 }
 0x6bc   :  { %v514_v54 = vmul.f32 %v879_v53, %v505_v39 }
 0x6be   :  { %v517_v55 = vpack.c.bf16 %v514_v54, %v514_v54 }
 0x6c0   :  { %519 = vrot.lane.b32.xlu1 %v517_v55, %s930_s27 }
 0x6c4   :  { %148 = vperm.xlu1 %837, %v23_v52  }
 0x6c8   :  { %838 = vset.pattern.permute.xlu1 %v928_v1 }
 0x732   :  { %v520_v56 = vpop.permute.xlu1 %519 }
 0x733   :  { %821 = vmatmul.mubr.msk.bf16.vlgmr.msra.gmra.mrb[4].mxu1 %vm309_vm1, %v520_v56 }
 0x734   :  { %663 = vmatpush1.bf16.msra.mxu1 %v1009_v44  ;;  %694 = vmatprep.mubr.bf16.mxu1 %v928_v1 }
 0x735   :  { %664 = vmatprep.subr.bf16.mxu1 %v1014_v45 }
 0x738   :  { %665 = vmatpush1.bf16.msra.mxu1 %v1023_v46 }
 0x739   :  { %666 = vmatprep.subr.bf16.mxu1 %v1030_v47 }
 0x73c   :  { %667 = vmatpush1.bf16.msra.mxu1 %v1037_v48 }
 0x73d   :  { %668 = vmatprep.subr.bf16.mxu1 %v1044_v49 }
 0x740   :  { %669 = vmatpush1.bf16.msra.mxu1 %v1051_v50 }
 0x743   :  { %v149_v60 = vpop.permute.xlu1 %148 }
 0x744   :  { %v189_v62 = vmul.f32 %v988_v23, %v149_v60  ;;  %v190_v0 = vmul.f32 %v990_v24, %v149_v60 }
 0x746   :  { %v205_v3 = vadd.f32 %v189_v62, %v123_v61  ;;  %v206_v4 = vadd.f32 %v190_v0, %v124_v63  ;;  %v25_v61 = vld [vmem:[%s1225_s0 + $0x30] sm:$0xff] }
 0x806   :  { %v558_v5 = vpop.f32.mrb[4].mxu1 }
 0x807   :  { %v565_v6 = vadd.f32 %v558_v5, %v205_v3  ;;  %v560_v7 = vpop.f32.mrb[5].mxu1 }
 0x808   :  { %v566_v8 = vadd.f32 %v560_v7, %v206_v4  ;;  %v562_v9 = vpop.f32.mrb[6].mxu1 }
 0x809   :  { %880 = vtanh.f32 %v565_v6  ;;  %v563_v10 = vpop.f32.mrb[7].mxu1 }
 0x80a   :  { %882 = vtanh.f32 %v566_v8 }
 0x813   :  { %v881_v11 = vpop.eup %880 }
 0x814   :  { %v883_v12 = vpop.eup %882  ;;  %v569_v13 = vmul.f32 0.5, %v881_v11 }
 0x815   :  { %v570_v16 = vmul.f32 0.5, %v883_v12 }
 0x816   :  { %v571_v18 = vadd.f32 0.5, %v569_v13 }
 0x817   :  { %v572_v17 = vadd.f32 0.5, %v570_v16 }
 0x818   :  { %v575_v25 = vmul.f32 %v571_v18, %v512_v51 }
 0x819   :  { %v574_v21 = vsel %vm243_vm0, %v572_v17, %v883_v12 }
 0x81a   :  { %v576_v22 = vmul.f32 %v574_v21, %v571_v18 }
 0x81c   :  { %578 = vrot.lane.b32.xlu1 %v576_v22, %s930_s27 }
 0x820   :  { %56 = vperm.xlu1 %838, %v24_v28  }
 0x824   :  { %841 = vset.pattern.permute.xlu1 %v929_v2 }
 0x88e   :  { %v579_v26 = vpop.permute.xlu1 %578 }
 0x88f   :  { %v581_v27 = vadd.f32 %v579_v26, %v575_v25 }
 0x891   :  { %884 = vtanh.f32 %v581_v27 }
 0x89b   :  { %v885_v29 = vpop.eup %884 }
 0x89c   :  { %v583_v43 = vmul.f32 %v885_v29, %v574_v21 }
 0x89e   :  { %v586_v30 = vpack.c.bf16 %v583_v43, %v583_v43 }
 0x89f   :  { %v57_v32 = vpop.permute.xlu1 %56 }
 0x8a0   :  { %588 = vrot.lane.b32.xlu0 %v586_v30, %s930_s27  ;;  %v98_v34 = vmul.f32 %v978_v14, %v57_v32  ;;  %v99_v35 = vmul.f32 %v980_v15, %v57_v32 }
 0x8a2   :  { %v125_v36 = vadd.f32 %v982_v19, %v98_v34 }
 0x8a4   :  { %152 = vperm.xlu0 %839, %v24_v28  }
 0x8a8   :  { %840 = vset.pattern.permute.xlu0 %v928_v1 }
 0x8a9   :  { %61 = vperm.xlu0 %840, %v25_v61  }
 0x8ad   :  { %843 = vset.pattern.permute.xlu0 %v929_v2 }
 0x912   :  { %v589_v31 = vpop.permute.xlu0 %588 }
 0x913   :  { %822 = vmatmul.mubr.msk.bf16.vlgmr.msra.gmra.mrb[8].mxu0 %vm309_vm1, %v589_v31 }
 0x914   :  { %732 = vmatpush1.bf16.msra.mxu0 %v1009_v44  ;;  %763 = vmatprep.mubr.bf16.mxu0 %v928_v1 }
 0x915   :  { %733 = vmatprep.subr.bf16.mxu0 %v1014_v45 }
 0x918   :  { %734 = vmatpush1.bf16.msra.mxu0 %v1023_v46  ;;  %v126_v46 = vadd.f32 %v984_v20, %v99_v35  ;;  %v26_v35 = vld [vmem:[%s1225_s0 + $0x38] sm:$0xff]  ;;  %s931_s0 = smov [#allocation3]  }
 0x919   :  { %735 = vmatprep.subr.bf16.mxu0 %v1030_v47  ;;  %s802_s1 = sshll.u32 %s931_s0, 4  ;;  %s803_s1 = int_to_ptr.vmem [resolvable:$true] %s802_s1 }
 0x91a   :  { %s904_s2 = scalar_lea.vmem %s803_s1, 128  ;;  %p909_p1 = scmp.lt.s32.totalorder %s803_s1, %s803_s1 }
 0x91b   :  { %p905_p0 = scmp.ne.s32.totalorder %s803_s1, %s904_s2  ;;  %p910_p2 = scmp.lt.s32.totalorder %s904_s2, %s904_s2 }
 0x91c   :  { %736 = vmatpush1.bf16.msra.mxu0 %v1037_v48 }
 0x91d   :  { %737 = vmatprep.subr.bf16.mxu0 %v1044_v49  ;;  %p911_p3 = por %p910_p2, %p909_p1 }
 0x91f   :  { %p912_p4 = pnand %p911_p3, %p905_p0 }
 0x920   :  { %738 = vmatpush1.bf16.msra.mxu0 %v1051_v50 }
 0x923   :  { %v153_v44 = vpop.permute.xlu0 %152 }
 0x924   :  { %v191_v45 = vmul.f32 %v988_v23, %v153_v44  ;;  %v192_v47 = vmul.f32 %v990_v24, %v153_v44 }
 0x926   :  { %v207_v37 = vadd.f32 %v191_v45, %v125_v36  ;;  %v208_v48 = vadd.f32 %v192_v47, %v126_v46 }
 0x928   :  { %v62_v4 = vpop.permute.xlu0 %61 }
 0x929   :  { %v100_v5 = vmul.f32 %v978_v14, %v62_v4  ;;  %v101_v6 = vmul.f32 %v980_v15, %v62_v4 }
 0x92b   :  { %v127_v8 = vadd.f32 %v982_v19, %v100_v5  ;;  %v128_v9 = vadd.f32 %v984_v20, %v101_v6 }
 0x9e6   :  { %v627_v38 = vpop.f32.mrb[8].mxu0 }
 0x9e7   :  { %v634_v49 = vadd.f32 %v627_v38, %v207_v37  ;;  %v629_v39 = vpop.f32.mrb[9].mxu0 }
 0x9e8   :  { %v635_v50 = vadd.f32 %v629_v39, %v208_v48  ;;  %v631_v40 = vpop.f32.mrb[10].mxu0 }
 0x9e9   :  { %886 = vtanh.f32 %v634_v49  ;;  %v632_v41 = vpop.f32.mrb[11].mxu0 }
 0x9ea   :  { %888 = vtanh.f32 %v635_v50 }
 0x9f3   :  { %v887_v42 = vpop.eup %886 }
 0x9f4   :  { %v889_v51 = vpop.eup %888  ;;  %v638_v52 = vmul.f32 0.5, %v887_v42 }
 0x9f5   :  { %v639_v53 = vmul.f32 0.5, %v889_v51 }
 0x9f6   :  { %v640_v55 = vadd.f32 0.5, %v638_v52 }
 0x9f7   :  { %v641_v54 = vadd.f32 0.5, %v639_v53 }
 0x9f8   :  { %v644_v58 = vmul.f32 %v640_v55, %v581_v27 }
 0x9f9   :  { %v643_v56 = vsel %vm243_vm0, %v641_v54, %v889_v51 }
 0x9fa   :  { %v645_v57 = vmul.f32 %v643_v56, %v640_v55 }
 0x9fc   :  { %647 = vrot.lane.b32.xlu1 %v645_v57, %s930_s27 }
 0xa6e   :  { %v648_v59 = vpop.permute.xlu1 %647 }
 0xa6f   :  { %v650_v60 = vadd.f32 %v648_v59, %v644_v58 }
 0xa71   :  { %890 = vtanh.f32 %v650_v60 }
 0xa7b   :  { %v891_v62 = vpop.eup %890 }
 0xa7c   :  { %v652_v63 = vmul.f32 %v891_v62, %v643_v56 }
 0xa7e   :  { %v655_v0 = vpack.c.bf16 %v652_v63, %v652_v63 }
 0xa80   :  { %657 = vrot.lane.b32.xlu1 %v655_v0, %s930_s27 }
 0xa84   :  { %156 = vperm.xlu1 %841, %v25_v61  }
 0xa88   :  { %842 = vset.pattern.permute.xlu1 %v928_v1 }
 0xaf2   :  { %v658_v3 = vpop.permute.xlu1 %657 }
 0xaf3   :  { %823 = vmatmul.mubr.msk.bf16.vlgmr.msra.gmra.mrb[8].mxu1 %vm309_vm1, %v658_v3 }
 0xb03   :  { %v157_v7 = vpop.permute.xlu1 %156 }
 0xb04   :  { %v193_v2 = vmul.f32 %v988_v23, %v157_v7  ;;  %v194_v10 = vmul.f32 %v990_v24, %v157_v7 }
 0xb06   :  { %v209_v11 = vadd.f32 %v193_v2, %v127_v8  ;;  %v210_v12 = vadd.f32 %v194_v10, %v128_v9 }
 0xbc6   :  { %v696_v1 = vpop.f32.mrb[8].mxu1 }
 0xbc7   :  { %v703_v13 = vadd.f32 %v696_v1, %v209_v11  ;;  %v698_v16 = vpop.f32.mrb[9].mxu1 }
 0xbc8   :  { %v704_v17 = vadd.f32 %v698_v16, %v210_v12  ;;  %v700_v18 = vpop.f32.mrb[10].mxu1 }
 0xbc9   :  { %892 = vtanh.f32 %v703_v13  ;;  %v701_v21 = vpop.f32.mrb[11].mxu1 }
 0xbca   :  { %894 = vtanh.f32 %v704_v17 }
 0xbd3   :  { %v893_v22 = vpop.eup %892 }
 0xbd4   :  { %v895_v25 = vpop.eup %894  ;;  %v707_v26 = vmul.f32 0.5, %v893_v22 }
 0xbd5   :  { %v708_v27 = vmul.f32 0.5, %v895_v25 }
 0xbd6   :  { %v709_v29 = vadd.f32 0.5, %v707_v26 }
 0xbd7   :  { %v710_v28 = vadd.f32 0.5, %v708_v27 }
 0xbd8   :  { %v713_v31 = vmul.f32 %v709_v29, %v650_v60 }
 0xbd9   :  { %v712_v43 = vsel %vm243_vm0, %v710_v28, %v895_v25 }
 0xbda   :  { %v714_v30 = vmul.f32 %v712_v43, %v709_v29 }
 0xbdc   :  { %716 = vrot.lane.b32.xlu1 %v714_v30, %s930_s27 }
 0xbe0   :  { %66 = vperm.xlu1 %842, %v26_v35  }
 0xc4e   :  { %v717_v32 = vpop.permute.xlu1 %716 }
 0xc4f   :  { %v719_v34 = vadd.f32 %v717_v32, %v713_v31 }
 0xc51   :  { %896 = vtanh.f32 %v719_v34 }
 0xc5b   :  { %v897_v44 = vpop.eup %896 }
 0xc5c   :  { %v721_v36 = vmul.f32 %v897_v44, %v712_v43 }
 0xc5e   :  { %v724_v45 = vpack.c.bf16 %v721_v36, %v721_v36 }
 0xc5f   :  { %v67_v47 = vpop.permute.xlu1 %66 }
 0xc60   :  { %726 = vrot.lane.b32.xlu0 %v724_v45, %s930_s27  ;;  %v102_v37 = vmul.f32 %v978_v14, %v67_v47  ;;  %v103_v48 = vmul.f32 %v980_v15, %v67_v47 }
 0xc62   :  { %v129_v49 = vadd.f32 %v982_v19, %v102_v37  ;;  %v130_v50 = vadd.f32 %v984_v20, %v103_v48 }
 0xc64   :  { %160 = vperm.xlu0 %843, %v26_v35  }
 0xcd2   :  { %v727_v46 = vpop.permute.xlu0 %726 }
 0xcd3   :  { %824 = vmatmul.mubr.msk.bf16.vlgmr.msra.gmra.mrb[12].mxu0 %vm309_vm1, %v727_v46 }
 0xce3   :  { %v161_v38 = vpop.permute.xlu0 %160 }
 0xce4   :  { %v195_v39 = vmul.f32 %v988_v23, %v161_v38  ;;  %v196_v40 = vmul.f32 %v990_v24, %v161_v38 }
 0xce6   :  { %v211_v41 = vadd.f32 %v195_v39, %v129_v49  ;;  %v212_v42 = vadd.f32 %v196_v40, %v130_v50 }
 0xda6   :  { %v765_v51 = vpop.f32.mrb[12].mxu0 }
 0xda7   :  { %v772_v52 = vadd.f32 %v765_v51, %v211_v41  ;;  %v767_v53 = vpop.f32.mrb[13].mxu0 }
 0xda8   :  { %v773_v54 = vadd.f32 %v767_v53, %v212_v42  ;;  %v769_v55 = vpop.f32.mrb[14].mxu0 }
 0xda9   :  { %898 = vtanh.f32 %v772_v52  ;;  %v770_v14 = vpop.f32.mrb[15].mxu0 }
 0xdaa   :  { %900 = vtanh.f32 %v773_v54 }
 0xdb3   :  { %v899_v15 = vpop.eup %898 }
 0xdb4   :  { %v901_v56 = vpop.eup %900  ;;  %v776_v57 = vmul.f32 0.5, %v899_v15 }
 0xdb5   :  { %v777_v19 = vmul.f32 0.5, %v901_v56 }
 0xdb6   :  { %v778_v23 = vadd.f32 0.5, %v776_v57 }
 0xdb7   :  { %v779_v58 = vadd.f32 0.5, %v777_v19 }
 0xdb8   :  { %v782_v59 = vmul.f32 %v778_v23, %v719_v34 }
 0xdb9   :  { %v781_v20 = vsel %vm243_vm0, %v779_v58, %v901_v56 }
 0xdba   :  { %v783_v24 = vmul.f32 %v781_v20, %v778_v23 }
 0xdbc   :  { %785 = vrot.lane.b32.xlu1 %v783_v24, %s930_s27 }
 0xe2e   :  { %v786_v60 = vpop.permute.xlu1 %785 }
 0xe2f   :  { %v788_v61 = vadd.f32 %v786_v60, %v782_v59 }
 0xe31   :  { %902 = vtanh.f32 %v788_v61 }
 0xe3b   :  { %v903_v62 = vpop.eup %902 }
 0xe3c   :  { %v790_v63 = vmul.f32 %v903_v62, %v781_v20 }
 0xe3e   :  { %792 = vrot.lane.b32.xlu1 %v790_v63, %s930_s27 }
 0xeb0   :  { %v793_v0 = vpop.permute.xlu1 %792 }
 0xeb1   :  { %795 = vst.msk [vmem:[#allocation3] sm:$0xff] %vm309_vm1, %v793_v0 }
 0xeb2   :  { %915 = shalt.err (!%p912_p4)
}
 0xeb3   :  { %s916_s25 = scalar_lea.hbm %s1229_s4, 128 }
 0xeb4   :  { %p917_p5 = scmp.ne.s32.totalorder %s1229_s4, %s916_s25  ;;  %p920_p6 = scmp.lt.u32.totalorder %s916_s25, %s1229_s4 }
 0xeb6   :  { %p922_p7 = pnand %p920_p6, %p917_p5 }
 0xeb8   :  { %925 = shalt.err (!%p922_p7)
}
 0xeb9   :  { %805 = dma.vmem_to_hbm [thread:$0]  %s803_s1, 128, %s1229_s4, [#allocation4]  }
 0xeba   :  { %926 = dma.done.wait [#allocation4], 128  }
 0xebb   :  { %927 = vsyncadd [#allocation4], 4294967168 }
 0xebc   :  { %809 = vsyncpa [#allocation4], 1 }

</bundles_post_ra>
